<compile_context>
chip_gen: v7x
topology: tpu7x:2x2x1
jax: 0.10.0
libtpu: 0.0.40
codegen_flags: <defaults>
</compile_context>

<pallas_src>
import functools

import jax
import jax.numpy as jnp
from jax.experimental import pallas as pl
from jax.experimental.pallas import tpu as pltpu


_INV_SQRT2 = 0.7071067811865476


def geglu_kernel(x_ref, wh_ref, wg_ref, bh_ref, bg_ref, o_ref):
    # x_ref : (tm, dim_in)        wh_ref/wg_ref : (dim_in, tn)
    # bh_ref/bg_ref : (1, tn) f32 o_ref : (tm, tn)
    x = x_ref[...]  # native (bf16 or f32) dtype straight to the MXU

    h = jnp.dot(x, wh_ref[...], preferred_element_type=jnp.float32) + bh_ref[...]
    g = jnp.dot(x, wg_ref[...], preferred_element_type=jnp.float32) + bg_ref[...]

    # exact GELU (matches torch.nn.functional.gelu, approximate='none'),
    # computed on the f32 accumulator output; rides VPU/EUP slack under MXU.
    gelu_g = 0.5 * g * (1.0 + jax.lax.erf(g * jnp.float32(_INV_SQRT2)))

    o_ref[...] = (h * gelu_g).astype(o_ref.dtype)


def _round_up(x, m):
    return ((x + m - 1) // m) * m


def _cdiv(a, b):
    return -(-a // b)


def _col_tiling(dim_out, tn):
    """Lane-dense column tiling: n_col tiles of tn_eff (multiple of 128)."""
    n_col = max(1, _cdiv(dim_out, tn))
    tn_eff = _round_up(_cdiv(dim_out, n_col), 128)
    return n_col, tn_eff, n_col * tn_eff


def prepare_geglu_params(weight, bias, *, compute_dtype=jnp.bfloat16, tn=256):
    """One-time (model-load) weight prep: split halves, transpose to
    (dim_in, dim_out), cast to the MXU compute dtype, pad columns to the tile
    grid. Keeps the per-call jit path free of weight transposes/copies.

    weight: (2*dim_out, dim_in) torch Linear layout; bias: (2*dim_out,).
    """
    two_dout, _ = weight.shape
    dim_out = two_dout // 2
    _, _, n_pad = _col_tiling(dim_out, tn)

    w_h = weight[:dim_out, :].T.astype(compute_dtype)        # (dim_in, dim_out)
    w_g = weight[dim_out:, :].T.astype(compute_dtype)        # (dim_in, dim_out)
    b_h = bias[:dim_out].reshape(1, dim_out).astype(jnp.float32)
    b_g = bias[dim_out:].reshape(1, dim_out).astype(jnp.float32)

    if n_pad != dim_out:
        pad = n_pad - dim_out
        w_h = jnp.pad(w_h, ((0, 0), (0, pad)))
        w_g = jnp.pad(w_g, ((0, 0), (0, pad)))
        b_h = jnp.pad(b_h, ((0, 0), (0, pad)))
        b_g = jnp.pad(b_g, ((0, 0), (0, pad)))
    return w_h, w_g, b_h, b_g


@functools.partial(jax.jit, static_argnames=("dim_out", "tm", "tn"))
def geglu(x, w_h, w_g, b_h, b_g, *, dim_out, tm=512, tn=256):
    """x: (..., dim_in). w_h/w_g/b_h/b_g from prepare_geglu_params (same tn).

    tm/tn are tunable row / output-column tiles (v6e: tm=512-1024, tn=256;
    v5e: 256/256 already MXU-bound; v7x: 512/256 to fit the 64 MiB VMEM).
    """
    orig_shape = x.shape
    dim_in = x.shape[-1]
    M = 1
    for d in x.shape[:-1]:
        M *= d

    cdt = w_h.dtype                      # MXU compute dtype (bf16 recommended)
    odt = x.dtype                        # output keeps the activation dtype
    cs = jnp.dtype(cdt).itemsize
    os_ = jnp.dtype(odt).itemsize

    n_col, tn_eff, n_pad = _col_tiling(dim_out, tn)
    assert w_h.shape[1] == n_pad, "params prepared with a different tn"

    # Row tiling: minimal padding (at most one sublane group per tile).
    sub = max(8 * (4 // cs), 8 * (4 // os_))        # 8 for f32, 16 for bf16
    n_row = max(1, _cdiv(M, tm))
    tm_eff = _round_up(_cdiv(M, n_row), sub)
    m_pad = n_row * tm_eff

    # Shrink tiles if the double-buffered working set would blow the VMEM
    # budget (40 MiB target keeps headroom on v7x's 64 MiB per-core VMEM).
    def working_set(tm_e, tn_e):
        return 2 * (tm_e * dim_in * cs          # x tile
                    + 2 * dim_in * tn_e * cs    # W_h + W_g tiles
                    + 2 * tn_e * 4              # bias tiles (f32)
                    + tm_e * tn_e * os_)        # output tile

    budget = 40 << 20
    while working_set(tm_eff, tn_eff) > budget:
        if tm_eff > sub:
            n_row *= 2
            tm_eff = _round_up(_cdiv(M, n_row), sub)
            m_pad = n_row * tm_eff
        elif tn_eff >= 256 and n_pad % (tn_eff // 2) == 0:
            tn_eff //= 2
            n_col = n_pad // tn_eff
        else:
            break
    ws = working_set(tm_eff, tn_eff)
    vmem_limit = int(min(max(ws + (4 << 20), 16 << 20), 56 << 20))

    # Activation prep (cheap, per-call): cast to compute dtype, pad rows.
    x2d = x.reshape(M, dim_in)
    if x2d.dtype != cdt:
        x2d = x2d.astype(cdt)
    if m_pad != M:
        x2d = jnp.pad(x2d, ((0, m_pad - M), (0, 0)))

    grid = (n_row, n_col)

    cost = pl.CostEstimate(
        flops=2 * m_pad * dim_in * (2 * n_pad),
        transcendentals=m_pad * n_pad,
        bytes_accessed=int(m_pad * dim_in * cs            # x read once
                           + n_row * 2 * dim_in * n_pad * cs  # W re-streamed / row tile
                           + 2 * n_pad * 4                 # bias
                           + m_pad * n_pad * os_),         # output
    )

    out2d = pl.pallas_call(
        geglu_kernel,
        out_shape=jax.ShapeDtypeStruct((m_pad, n_pad), odt),
        grid_spec=pltpu.PrefetchScalarGridSpec(
            num_scalar_prefetch=0,
            grid=grid,
            in_specs=[
                pl.BlockSpec((tm_eff, dim_in), lambda i, j: (i, 0)),   # x rows
                pl.BlockSpec((dim_in, tn_eff), lambda i, j: (0, j)),   # W_h cols
                pl.BlockSpec((dim_in, tn_eff), lambda i, j: (0, j)),   # W_g cols
                pl.BlockSpec((1, tn_eff), lambda i, j: (0, j)),        # b_h cols
                pl.BlockSpec((1, tn_eff), lambda i, j: (0, j)),        # b_g cols
            ],
            out_specs=pl.BlockSpec((tm_eff, tn_eff), lambda i, j: (i, j)),
        ),
        compiler_params=pltpu.CompilerParams(
            dimension_semantics=("parallel", "parallel"),
            vmem_limit_bytes=vmem_limit,
        ),
        cost_estimate=cost,
    )(x2d, w_h, w_g, b_h, b_g)

    out2d = out2d[:M, :dim_out]
    return out2d.reshape(orig_shape[:-1] + (dim_out,))


def geglu_reference(x, weight, bias):
    y = jnp.einsum("...d,od->...o", x, weight) + bias
    d = weight.shape[0] // 2
    h, g = y[..., :d], y[..., d:]
    return h * (0.5 * g * (1.0 + jax.lax.erf(g / jnp.sqrt(2.0))))


if __name__ == "__main__":
    # small, deterministic shapes: batch=2, seq=8, dim_in=32, dim_out=32
    B, S, dim_in, dim_out = 2, 8, 32, 32

    key = jax.random.PRNGKey(0)
    kx, kw, kb = jax.random.split(key, 3)

    x = jax.random.normal(kx, (B, S, dim_in), dtype=jnp.float32)
    # torch Linear weight layout: (out_features, in_features) = (2*dim_out, dim_in)
    weight = jax.random.normal(kw, (2 * dim_out, dim_in), dtype=jnp.float32) * 0.05
    bias = jax.random.normal(kb, (2 * dim_out,), dtype=jnp.float32) * 0.05

    # --- exact f32 compute path: tight check vs. the fp32 reference ---------
    p32 = prepare_geglu_params(weight, bias, compute_dtype=jnp.float32)
    out32 = jax.block_until_ready(geglu(x, *p32, dim_out=dim_out))
    ref = geglu_reference(x, weight, bias)
    assert out32.shape == (B, S, dim_out)
    assert jnp.allclose(out32, ref, atol=1e-5, rtol=1e-5), "f32 path mismatch"

    # --- production bf16-operand path (f32 MXU accumulation) ----------------
    pbf = prepare_geglu_params(weight, bias, compute_dtype=jnp.bfloat16)
    outbf = jax.block_until_ready(geglu(x, *pbf, dim_out=dim_out))
    ref_bf = geglu_reference(
        x.astype(jnp.bfloat16).astype(jnp.float32),
        weight.astype(jnp.bfloat16).astype(jnp.float32),
        bias,
    )
    assert outbf.shape == (B, S, dim_out)
    assert jnp.allclose(outbf, ref_bf, atol=2e-2, rtol=2e-2), "bf16 path mismatch"

    print("KERNEL_OK")
</pallas_src>

<mosaic_0001>
module attributes {stable_mosaic.version = 11 : i64} {
  func.func @geglu_kernel(%arg0: i32, %arg1: i32, %arg2: memref<16x32xf32, #tpu.memory_space<vmem>>, %arg3: memref<32x128xf32, #tpu.memory_space<vmem>>, %arg4: memref<32x128xf32, #tpu.memory_space<vmem>>, %arg5: memref<1x128xf32, #tpu.memory_space<vmem>>, %arg6: memref<1x128xf32, #tpu.memory_space<vmem>>, %arg7: memref<16x128xf32, #tpu.memory_space<vmem>>) attributes {dimension_semantics = [#tpu.dimension_semantics<parallel>, #tpu.dimension_semantics<parallel>], iteration_bounds = array<i64: 1, 1>, scalar_prefetch = 0 : i64, scratch_operands = 0 : i64, tpu.core_type = #tpu.core_type<tc>, window_params = [{transform_indices = @transform_0, window_bounds = array<i64: 16, 32>}, {transform_indices = @transform_1, window_bounds = array<i64: 32, 128>}, {transform_indices = @transform_2, window_bounds = array<i64: 32, 128>}, {transform_indices = @transform_3, window_bounds = array<i64: 1, 128>}, {transform_indices = @transform_4, window_bounds = array<i64: 1, 128>}, {transform_indices = @transform_5, window_bounds = array<i64: 16, 128>}]} {
    %c0 = arith.constant 0 : index
    %c0_0 = arith.constant 0 : index
    %0 = vector.load %arg2[%c0, %c0_0] : memref<16x32xf32, #tpu.memory_space<vmem>>, vector<16x32xf32>
    %c0_1 = arith.constant 0 : index
    %c0_2 = arith.constant 0 : index
    %1 = vector.load %arg3[%c0_1, %c0_2] : memref<32x128xf32, #tpu.memory_space<vmem>>, vector<32x128xf32>
    %cst = arith.constant dense<0.000000e+00> : vector<16x128xf32>
    %2 = tpu.matmul %0, %1, %cst {dimension_numbers = #tpu.dot_dimension_numbers<[1], [0], [0], [1], [0, 0, 1, 1], [], []>} : vector<16x32xf32>, vector<32x128xf32>, vector<16x128xf32> -> vector<16x128xf32>
    %c0_3 = arith.constant 0 : index
    %c0_4 = arith.constant 0 : index
    %3 = vector.load %arg5[%c0_3, %c0_4] : memref<1x128xf32, #tpu.memory_space<vmem>>, vector<1x128xf32>
    %4 = vector.broadcast %3 : vector<1x128xf32> to vector<16x128xf32>
    %5 = arith.addf %2, %4 : vector<16x128xf32>
    %c0_5 = arith.constant 0 : index
    %c0_6 = arith.constant 0 : index
    %6 = vector.load %arg4[%c0_5, %c0_6] : memref<32x128xf32, #tpu.memory_space<vmem>>, vector<32x128xf32>
    %cst_7 = arith.constant dense<0.000000e+00> : vector<16x128xf32>
    %7 = tpu.matmul %0, %6, %cst_7 {dimension_numbers = #tpu.dot_dimension_numbers<[1], [0], [0], [1], [0, 0, 1, 1], [], []>} : vector<16x32xf32>, vector<32x128xf32>, vector<16x128xf32> -> vector<16x128xf32>
    %c0_8 = arith.constant 0 : index
    %c0_9 = arith.constant 0 : index
    %8 = vector.load %arg6[%c0_8, %c0_9] : memref<1x128xf32, #tpu.memory_space<vmem>>, vector<1x128xf32>
    %9 = vector.broadcast %8 : vector<1x128xf32> to vector<16x128xf32>
    %10 = arith.addf %7, %9 : vector<16x128xf32>
    %cst_10 = arith.constant 5.000000e-01 : f32
    %11 = vector.broadcast %cst_10 : f32 to vector<16x128xf32>
    %12 = arith.mulf %11, %10 : vector<16x128xf32>
    %cst_11 = arith.constant 0.707106769 : f32
    %13 = vector.broadcast %cst_11 : f32 to vector<16x128xf32>
    %14 = arith.mulf %10, %13 : vector<16x128xf32>
    %15 = math.erf %14 : vector<16x128xf32>
    %cst_12 = arith.constant 1.000000e+00 : f32
    %16 = vector.broadcast %cst_12 : f32 to vector<16x128xf32>
    %17 = arith.addf %16, %15 : vector<16x128xf32>
    %18 = arith.mulf %12, %17 : vector<16x128xf32>
    %19 = arith.mulf %5, %18 : vector<16x128xf32>
    %c0_13 = arith.constant 0 : index
    %c0_14 = arith.constant 0 : index
    %20 = vector.load %arg7[%c0_13, %c0_14] : memref<16x128xf32, #tpu.memory_space<vmem>>, vector<16x128xf32>
    tpu.vector_store %arg7[%c0_13, %c0_14], %19 {strides = array<i32>} : memref<16x128xf32, #tpu.memory_space<vmem>>, vector<16x128xf32>,
    return
  }
  func.func @transform_0(%arg0: i32, %arg1: i32) -> (i32, i32) {
    %c0_i32 = arith.constant 0 : i32
    %c0_i32_0 = arith.constant 0 : i32
    return %arg0, %c0_i32 : i32, i32
  }
  func.func @transform_1(%arg0: i32, %arg1: i32) -> (i32, i32) {
    %c0_i32 = arith.constant 0 : i32
    %c0_i32_0 = arith.constant 0 : i32
    return %c0_i32, %arg1 : i32, i32
  }
  func.func @transform_2(%arg0: i32, %arg1: i32) -> (i32, i32) {
    %c0_i32 = arith.constant 0 : i32
    %c0_i32_0 = arith.constant 0 : i32
    return %c0_i32, %arg1 : i32, i32
  }
  func.func @transform_3(%arg0: i32, %arg1: i32) -> (i32, i32) {
    %c0_i32 = arith.constant 0 : i32
    %c0_i32_0 = arith.constant 0 : i32
    return %c0_i32, %arg1 : i32, i32
  }
  func.func @transform_4(%arg0: i32, %arg1: i32) -> (i32, i32) {
    %c0_i32 = arith.constant 0 : i32
    %c0_i32_0 = arith.constant 0 : i32
    return %c0_i32, %arg1 : i32, i32
  }
  func.func @transform_5(%arg0: i32, %arg1: i32) -> (i32, i32) {
    %c0_i32 = arith.constant 0 : i32
    return %arg0, %arg1 : i32, i32
  }
}

</mosaic_0001>

<bundles_post_ra>
// kernel: geglu.1
= control target key start
LH: loop header
LB: loop body
LE: loop exit
PB: predicated region body
PF: predicated region fallthrough
CT: control target
= control target key end

     0   :  { %10 = vsyncpa [#allocation3], 0  ;;  %s500_s0 = inlined_call_operand.hbm [shape: f32[16,32], index: 0, kind: input, shape index: {}]   ;;  %s501_s1 = inlined_call_operand.hbm [shape: f32[32,128], index: 1, kind: input, shape index: {}]   ;;  %s502_s2 = inlined_call_operand.hbm [shape: f32[32,128], index: 2, kind: input, shape index: {}]   ;;  %s503_s3 = inlined_call_operand.vmem [shape: f32[1,128], index: 3, kind: input, shape index: {}]   ;;  %s504_s4 = inlined_call_operand.vmem [shape: f32[1,128], index: 4, kind: input, shape index: {}]   ;;  %s505_s5 = inlined_call_operand.vmem [shape: f32[16,128], index: 5, kind: output, shape index: {}]  }
   0x1   :  { %11 = vsyncpa [#allocation5], 0  ;;  %s397_s18 = smov [#allocation4]   ;;  %s398_s20 = smov [#allocation2]  }
   0x2   :  { %s29_s19 = sshll.u32 %s397_s18, 4  ;;  %s17_s21 = sshll.u32 %s398_s20, 4  ;;  %s30_s19 = int_to_ptr.vmem [resolvable:$true] %s29_s19  ;;  %s432_s21 = int_to_ptr.vmem [resolvable:$true] %s17_s21 }
   0x3   :  { %s327_s24 = scalar_lea.hbm %s501_s1, 512 }
   0x4   :  { %p328_p0 = scmp.ne.s32.totalorder %s501_s1, %s327_s24  ;;  %p331_p1 = scmp.lt.u32.totalorder %s327_s24, %s501_s1 }
   0x6   :  { %p333_p2 = pnand %p331_p1, %p328_p0 }
   0x8   :  { %336 = shalt.err (!%p333_p2)
}
   0x9   :  { %s337_s29 = scalar_lea.vmem %s30_s19, 512  ;;  %p342_p4 = scmp.lt.s32.totalorder %s30_s19, %s30_s19 }
   0xa   :  { %p338_p3 = scmp.ne.s32.totalorder %s30_s19, %s337_s29  ;;  %p343_p5 = scmp.lt.s32.totalorder %s337_s29, %s337_s29 }
   0xc   :  { %p344_p6 = por %p343_p5, %p342_p4 }
   0xe   :  { %p345_p7 = pnand %p344_p6, %p338_p3 }
  0x10   :  { %348 = shalt.err (!%p345_p7)
}
  0x11   :  { %s399_s30 = smov 128   ;;  %s400_s6 = smov 8  }
  0x12   :  { %35 = dma.hbm_to_vmem [thread:$0]  %s501_s1, 512, %s30_s19, [#allocation5], %s399_s30, %s399_s30, %s400_s6  }
  0x13   :  { %s349_s11 = scalar_lea.hbm %s500_s0, 256 }
  0x14   :  { %p350_p8 = scmp.ne.s32.totalorder %s500_s0, %s349_s11  ;;  %p353_p9 = scmp.lt.u32.totalorder %s349_s11, %s500_s0 }
  0x16   :  { %p355_p10 = pnand %p353_p9, %p350_p8 }
  0x18   :  { %358 = shalt.err (!%p355_p10)
}
  0x19   :  { %s359_s16 = scalar_lea.vmem %s432_s21, 256  ;;  %p364_p12 = scmp.lt.s32.totalorder %s432_s21, %s432_s21 }
  0x1a   :  { %p360_p11 = scmp.ne.s32.totalorder %s432_s21, %s359_s16  ;;  %p365_p13 = scmp.lt.s32.totalorder %s359_s16, %s359_s16 }
  0x1c   :  { %p366_p0 = por %p365_p13, %p364_p12 }
  0x1e   :  { %p367_p1 = pnand %p366_p0, %p360_p11 }
  0x20   :  { %370 = shalt.err (!%p367_p1)
}
  0x21   :  { %23 = dma.hbm_to_vmem [thread:$0]  %s500_s0, 256, %s432_s21, [#allocation3], %s399_s30, %s399_s30, %s400_s6  }
  0x22   :  { %s401_s18 = smov [#allocation6]   ;;  %s371_s23 = scalar_lea.hbm %s502_s2, 512 }
  0x23   :  { %s41_s19 = sshll.u32 %s401_s18, 4  ;;  %p372_p2 = scmp.ne.s32.totalorder %s502_s2, %s371_s23  ;;  %s42_s19 = int_to_ptr.vmem [resolvable:$true] %s41_s19 }
  0x24   :  { %p375_p3 = scmp.lt.u32.totalorder %s371_s23, %s502_s2 }
  0x26   :  { %p377_p4 = pnand %p375_p3, %p372_p2 }
  0x28   :  { %380 = shalt.err (!%p377_p4)
}
  0x29   :  { %s381_s28 = scalar_lea.vmem %s42_s19, 512  ;;  %p386_p6 = scmp.lt.s32.totalorder %s42_s19, %s42_s19 }
  0x2a   :  { %p382_p5 = scmp.ne.s32.totalorder %s42_s19, %s381_s28  ;;  %p387_p7 = scmp.lt.s32.totalorder %s381_s28, %s381_s28 }
  0x2c   :  { %p388_p8 = por %p387_p7, %p386_p6 }
  0x2e   :  { %p389_p9 = pnand %p388_p8, %p382_p5 }
  0x30   :  { %392 = shalt.err (!%p389_p9)
}
  0x31   :  { %47 = dma.hbm_to_vmem [thread:$0]  %s502_s2, 512, %s42_s19, [#allocation5], %s399_s30, %s399_s30, %s400_s6  }
  0x32   :  { %393 = dma.done.wait [#allocation3], 256  }
  0x33   :  { %394 = vsyncadd [#allocation3], 4294967040 }
  0x34   :  { %395 = dma.done.wait [#allocation5], 1024  }
  0x35   :  { %396 = vsyncadd [#allocation5], 4294966272  ;;  %vm74_vm0 = vcmask 261120   ;;  %v156_v0 = vld [vmem:[#allocation6] sm:$0xff]  ;;  %v157_v1 = vld [vmem:[#allocation6 + $0x8] sm:$0xff] }
  0x36   :  { %v158_v2 = vld [vmem:[#allocation6 + $0x10] sm:$0xff]  ;;  %v310_v3 = vpack.c.bf16 %v157_v1, %v156_v0  ;;  %v159_v4 = vld [vmem:[#allocation6 + $0x18] sm:$0xff]  ;;  %v63_v7 = vld [vmem:[#allocation4] sm:$0xff] }
  0x37   :  { %v61_v5 = vld [vmem:[#allocation2] sm:$0xff]  ;;  %v314_v6 = vpack.c.bf16 %v159_v4, %v158_v2  ;;  %v64_v8 = vld [vmem:[#allocation4 + $0x8] sm:$0xff]  ;;  %v66_v11 = vld [vmem:[#allocation4 + $0x18] sm:$0xff] }
  0x38   :  { %299 = vmatprep.mubr.msk.f32.mxu1 %vm74_vm0, %v61_v5  ;;  %v65_v9 = vld [vmem:[#allocation4 + $0x10] sm:$0xff]  ;;  %288 = vmatprep.mubr.msk.f32.mxu0 %vm74_vm0, %v61_v5  ;;  %v302_v10 = vpack.c.bf16 %v64_v8, %v63_v7  ;;  %v62_v13 = vld [vmem:[#allocation2 + $0x8] sm:$0xff] }
  0x39   :  { %311 = vmatprep.subr.bf16.mxu1 %v310_v3  ;;  %v306_v12 = vpack.c.bf16 %v66_v11, %v65_v9  ;;  %v265_v14 = vld [vmem:[%s504_s4] ss:$0 sm:$0xff] }
  0x3a   :  { %313 = vmatpush3.bf16.msra.mxu1 %v310_v3  ;;  %303 = vmatprep.subr.bf16.mxu0 %v302_v10  ;;  %v262_v23 = vld [vmem:[%s503_s3] ss:$0 sm:$0xff] }
  0x3b   :  { %315 = vmatprep.subr.bf16.mxu1 %v314_v6  ;;  %305 = vmatpush3.bf16.msra.mxu0 %v302_v10 }
  0x3c   :  { %307 = vmatprep.subr.bf16.mxu0 %v306_v12 }
  0x3e   :  { %317 = vmatpush3.bf16.msra.mxu1 %v314_v6 }
  0x3f   :  { %309 = vmatpush3.bf16.msra.mxu0 %v306_v12 }
  0x41   :  { %300 = vmatmul.mubr.msk.f32.vlgmr.msra.gmra.mrb[0].mxu1 %vm74_vm0, %v62_v13 }
  0x42   :  { %289 = vmatmul.mubr.msk.f32.vlgmr.msra.gmra.mrb[0].mxu0 %vm74_vm0, %v62_v13 }
 0x114   :  { %v301_v15 = vpop.f32.mrb[0].mxu1 }
 0x115   :  { %v239_v16 = vadd.f32 %v301_v15, %v265_v14  ;;  %v233_v17 = vpop.f32.mrb[1].mxu1  ;;  %v290_v19 = vpop.f32.mrb[0].mxu0 }
 0x116   :  { %v234_v18 = vadd.f32 %v265_v14, %v233_v17  ;;  %v147_v21 = vpop.f32.mrb[1].mxu0  ;;  %v153_v28 = vadd.f32 %v290_v19, %v262_v23 }
 0x117   :  { %v245_v20 = vmul.f32 0.70710677, %v239_v16  ;;  %v243_v26 = vmul.f32 0.5, %v239_v16  ;;  %v148_v31 = vadd.f32 %v262_v23, %v147_v21 }
 0x118   :  { %v244_v22 = vmul.f32 0.70710677, %v234_v18  ;;  %v242_v29 = vmul.f32 0.5, %v234_v18 }
 0x119   :  { %323 = verf.f32 %v245_v20 }
 0x11a   :  { %325 = verf.f32 %v244_v22 }
 0x123   :  { %v324_v24 = vpop.eup %323 }
 0x124   :  { %v326_v25 = vpop.eup %325  ;;  %v249_v27 = vadd.f32 1.0, %v324_v24 }
 0x125   :  { %v248_v30 = vadd.f32 1.0, %v326_v25 }
 0x126   :  { %v251_v32 = vmul.f32 %v249_v27, %v243_v26 }
 0x127   :  { %v250_v33 = vmul.f32 %v248_v30, %v242_v29 }
 0x128   :  { %v253_v34 = vmul.f32 %v251_v32, %v153_v28 }
 0x129   :  { %v252_v35 = vmul.f32 %v250_v33, %v148_v31 }
 0x12a   :  { %255 = vst [vmem:[%s505_s5 + $0x8] sm:$0xff] %v253_v34 }
 0x12b   :  { %254 = vst [vmem:[%s505_s5] sm:$0xff] %v252_v35 }
 0x12c   :  { %260 = vsyncpa [#allocation3], 1 }
 0x12d   :  { %261 = vsyncpa [#allocation5], 1 }

</bundles_post_ra>
